<compile_context>
chip_gen: v6e
topology: v6e:2x2x1
jax: 0.10.0
libtpu: 0.0.40
codegen_flags: <defaults>
</compile_context>

<pallas_src>
import math

import jax
import jax.numpy as jnp
from jax import lax
from jax.experimental import pallas as pl
from jax.experimental.pallas import tpu as pltpu

# ----------------------------- configuration -------------------------------
B = 2              # batch
T = 16             # sequence length
D_MODEL = 64       # model dim
N_HEADS = 4        # heads
EXPAND = 2         # expand_factor
LAYER_DEPTH = 0

HEAD_DIM = D_MODEL // N_HEADS * EXPAND      # 32
HD2 = HEAD_DIM // 2                         # 16 (rotary half / lambda dim)
H2 = N_HEADS // 2                           # 2  (number of head pairs)
D_EXP = D_MODEL * EXPAND                    # 128 == N_HEADS*HEAD_DIM
BT = B * T                                  # 32 (batch folded into rows)
LAMBDA_INIT = 0.8 - 0.6 * math.exp(-0.3 * LAYER_DEPTH)
RMS_EPS = 1.1920928955078125e-07            # torch.finfo(float32).eps (F.rms_norm default)
SCALE = 1.0 / math.sqrt(HEAD_DIM)           # flash-attn default softmax scale

# row offsets inside the single bf16 constant slab (all 16-row aligned)
OFF_BIAS = 0                       # (BT, 128)      causal + batch-block bias, tiled x4 heads
OFF_MSUM = OFF_BIAS + BT           # (128, 128)     head-membership / HEAD_DIM (RMS mean)
OFF_ONES = OFF_MSUM + D_EXP        # (128, 128)     32-lane key-block membership (softmax sums)
OFF_PROJ = OFF_ONES + D_EXP        # (128, 128)     c_proj^T padded to 128 output lanes
OFF_COS = OFF_PROJ + D_EXP         # (2*BT, 128)    rope cos, tiled for the [q;k] row stack
OFF_SIN = OFF_COS + 2 * BT         # (2*BT, 128)    rope sin with the half-sign pattern
OFF_HV = OFF_SIN + 2 * BT          # (8, 128)       [per-head K mask * SCALE ; signed pair masks]
CB_ROWS = OFF_HV + 2 * N_HEADS     # 552


# ------------------------------- kernel ------------------------------------
def diff_attn_kernel(x_ref, wqkv_ref, cb_ref, out_ref):
    f32 = jnp.float32
    bf16 = jnp.bfloat16
    x = x_ref[...]                                                     # (BT, D_MODEL) bf16

    # constant slab slices (all bf16 in VMEM; upcast the f32-math pieces)
    bias = cb_ref[OFF_BIAS:OFF_BIAS + BT, :].astype(f32)               # (32, 128)
    msum = cb_ref[OFF_MSUM:OFF_MSUM + D_EXP, :]                        # (128, 128) bf16
    ones_blk = cb_ref[OFF_ONES:OFF_ONES + D_EXP, :]                    # (128, 128) bf16
    wproj = cb_ref[OFF_PROJ:OFF_PROJ + D_EXP, :]                       # (128, 128) bf16
    cos2 = cb_ref[OFF_COS:OFF_COS + 2 * BT, :].astype(f32)             # (64, 128)
    sin2 = cb_ref[OFF_SIN:OFF_SIN + 2 * BT, :].astype(f32)             # (64, 128)
    hv = cb_ref[OFF_HV:OFF_HV + 2 * N_HEADS, :].astype(f32)            # (8, 128)
    hmask = hv[:N_HEADS]            # per-head K lane mask, softmax SCALE folded in
    vsign = hv[N_HEADS:]            # pair lane mask * {+1, -lambda_full}

    # 1. fused QKV projection: one bf16 MXU matmul, f32 accumulation
    qkv = jnp.dot(x, wqkv_ref[...], preferred_element_type=f32)        # (32, 384) f32
    q = qkv[:, :D_EXP]              # halves-split head layout (see wrapper)
    k = qkv[:, D_EXP:2 * D_EXP]
    v = qkv[:, 2 * D_EXP:]          # natural [pair0 (64 lanes) | pair1 (64 lanes)]

    # 2. RMS-norm + RoPE on the row-stacked [q; k] slab (single pass)
    qk = jnp.concatenate([q, k], axis=0)                               # (64, 128) f32
    ms = jnp.dot((qk * qk).astype(bf16), msum,
                 preferred_element_type=f32)                           # per-head mean(x^2)
    qkn = qk * lax.rsqrt(ms + RMS_EPS)
    # rope on the halves-split layout: swapping halves == lane rotate by 64 (XLU)
    qkr = qkn * cos2 + pltpu.roll(qkn, HD2 * N_HEADS, 1) * sin2
    qb = qkr[:BT].astype(bf16)                                         # (32, 128) q
    kr = qkr[BT:]                                                      # (32, 128) k (f32)

    # 3. one full-width score matmul: K masked per head (SCALE folded into hmask)
    #    -> lane-dense scores (32, 4*BT): lanes [h*32:(h+1)*32] = head h's keys
    kstack = jnp.concatenate([kr * hmask[h] for h in range(N_HEADS)],
                             axis=0).astype(bf16)                      # (128, 128)
    s = lax.dot_general(qb, kstack, (((1,), (1,)), ((), ())),
                        preferred_element_type=f32) + bias             # (32, 128)

    # 4. softmax: global row max is exact (softmax shift-invariance) and safe
    #    (RMS-normed scores are bounded by sqrt(HEAD_DIM)); per-head sums via
    #    one bf16 matmul against the 32-lane block-membership matrix
    p = jnp.exp(s - jnp.max(s, axis=-1, keepdims=True))                # (32, 128) f32
    denom = jnp.dot(p.astype(bf16), ones_blk,
                    preferred_element_type=f32)                        # block sums, per lane
    pn = (p * pl.reciprocal(denom, approx=True)).astype(bf16)          # normalized probs

    # 5. diff-attn combine folded into ONE PV matmul: signed, pair-masked V stack
    #    (rows 0:64 = +v per pair, rows 64:128 = -lambda*v per pair)
    vstack = jnp.concatenate([v * vsign[h] for h in range(N_HEADS)],
                             axis=0).astype(bf16)                      # (128, 128)
    y = jnp.dot(pn, vstack, preferred_element_type=f32)                # (32, 128) = y1 - lam*y2
    yb = y.astype(bf16)

    # 6. lane-dense output slab: rows 0:32 = pre-projection y, rows 32:64 = c_proj(y)
    out_ref[:BT, :] = yb.astype(f32)
    out_ref[BT:, :] = jnp.dot(yb, wproj, preferred_element_type=f32)


# --------------------------- wrapper / param prep ---------------------------
def prepare_params(Wq, Wk, Wv, Wproj, cos, sin, lq1, lk1, lq2, lk2):
    """Hoist all call-invariant work out of the kernel (done once)."""
    # halves-split column layout for Q/K: [h0_half1..h3_half1 | h0_half2..h3_half2]
    def split_halves(Wt):                                # Wt: (D_MODEL, N_HEADS*HEAD_DIM)
        return (Wt.reshape(D_MODEL, N_HEADS, 2, HD2)
                  .transpose(0, 2, 1, 3)
                  .reshape(D_MODEL, N_HEADS * HEAD_DIM))

    wqkv = jnp.concatenate([split_halves(Wq.T), split_halves(Wk.T), Wv.T],
                           axis=1).astype(jnp.bfloat16)                 # (D_MODEL, 3*D_EXP)

    # lambda_full (same bf16 arithmetic as the torch module)
    lam1 = jnp.exp(jnp.sum(lq1 * lk1)).astype(jnp.bfloat16)
    lam2 = jnp.exp(jnp.sum(lq2 * lk2)).astype(jnp.bfloat16)
    lam = (lam1 - lam2 + LAMBDA_INIT).astype(jnp.float32)

    # head id per lane in the halves-split layout; per-head K masks with SCALE folded in
    headid = (jnp.arange(D_EXP) % (N_HEADS * HD2)) // HD2
    hmask_scaled = ((jnp.arange(N_HEADS)[:, None] == headid[None, :])
                    .astype(jnp.float32) * SCALE)                        # (4, 128)

    # signed pair masks for the V stack (v layout is [pair0 | pair1]); -lambda folded in
    pairA = (jnp.arange(D_EXP) < 2 * HEAD_DIM).astype(jnp.float32)[None, :]
    pairB = 1.0 - pairA
    vsign = jnp.concatenate([pairA, pairB, -lam * pairA, -lam * pairB], axis=0)  # (4, 128)
    hv = jnp.concatenate([hmask_scaled, vsign], axis=0)                 # (8, 128)

    # block-diag(batch) + causal additive mask over (BT, BT) scores, tiled per head
    r = jnp.arange(BT)
    allowed = (r[:, None] // T == r[None, :] // T) & (r[:, None] >= r[None, :])
    bias = jnp.where(allowed, 0.0, -1e30).astype(jnp.float32)
    bias4 = jnp.tile(bias, (1, N_HEADS))                                # (32, 128)

    # RMS head-membership (mean over each head's 32 lanes) and key-block membership
    msum = (headid[:, None] == headid[None, :]).astype(jnp.float32) / HEAD_DIM  # (128, 128)
    blk = jnp.arange(D_EXP) // BT
    ones_blk = (blk[:, None] == blk[None, :]).astype(jnp.float32)       # (128, 128)

    # c_proj weight, transposed and lane-padded to 128 output lanes
    wproj_pad = jnp.zeros((D_EXP, D_EXP), jnp.float32).at[:, :D_MODEL].set(Wproj.T)

    # rope tables on the halves-split layout, tiled over batch and over the [q;k] stack
    cosr = jnp.tile(cos, (B, 2 * N_HEADS))                              # (BT, D_EXP)
    sinr = jnp.tile(jnp.concatenate([jnp.tile(sin, (1, N_HEADS)),
                                     -jnp.tile(sin, (1, N_HEADS))], axis=1), (B, 1))
    cos2 = jnp.concatenate([cosr, cosr], axis=0)                        # (2*BT, D_EXP)
    sin2 = jnp.concatenate([sinr, sinr], axis=0)

    # single bf16 constant slab (offsets are module-level constants shared with the kernel)
    cb = jnp.concatenate([bias4, msum, ones_blk, wproj_pad, cos2, sin2, hv],
                         axis=0).astype(jnp.bfloat16)                   # (CB_ROWS, 128)
    assert cb.shape == (CB_ROWS, D_EXP)
    return wqkv, cb


def diff_attention(x, params):
    wqkv, cb = params
    x_flat = x.reshape(BT, D_MODEL).astype(jnp.bfloat16)

    out = pl.pallas_call(
        diff_attn_kernel,
        grid=(1,),                                      # batch folded into one step
        in_specs=[
            pl.BlockSpec((BT, D_MODEL), lambda i: (0, 0)),       # x (bf16)
            pl.BlockSpec((D_MODEL, 3 * D_EXP), lambda i: (0, 0)),  # fused Wqkv (bf16)
            pl.BlockSpec((CB_ROWS, D_EXP), lambda i: (0, 0)),    # constant slab (bf16)
        ],
        out_specs=pl.BlockSpec((2 * BT, D_EXP), lambda i: (0, 0)),
        out_shape=jax.ShapeDtypeStruct((2 * BT, D_EXP), jnp.float32),
        compiler_params=pltpu.CompilerParams(dimension_semantics=("arbitrary",)),
    )(x_flat, wqkv, cb)

    y_pre = out[:BT].reshape(B, T, D_EXP)               # pre-projection y (already bf16-rounded)
    y_proj = out[BT:, :D_MODEL].reshape(B, T, D_MODEL)  # c_proj(y)
    return y_pre, y_proj


# ---------------------------- pure-JAX reference ----------------------------
def reference(x, Wq, Wk, Wv, Wproj, cos, sin, lq1, lk1, lq2, lk2):
    q = (x @ Wq.T).reshape(B, T, N_HEADS, HEAD_DIM)
    k = (x @ Wk.T).reshape(B, T, N_HEADS, HEAD_DIM)
    v = (x @ Wv.T).reshape(B, T, H2, 2 * HEAD_DIM)

    def rms(t):
        return t * lax.rsqrt(jnp.mean(t * t, axis=-1, keepdims=True) + RMS_EPS)

    def rope(t):
        t1, t2 = t[..., :HD2], t[..., HD2:]
        c, s = cos[None, :, None, :], sin[None, :, None, :]
        return jnp.concatenate([t1 * c + t2 * s, -t1 * s + t2 * c], axis=-1)

    q, k = rope(rms(q)), rope(rms(k))
    q1, q2 = q[:, :, :H2], q[:, :, H2:]
    k1, k2 = k[:, :, :H2], k[:, :, H2:]

    def attn(qh, kh, vh):
        qb, kb, vb = (a.astype(jnp.bfloat16) for a in (qh, kh, vh))
        s = jnp.einsum('bqhd,bkhd->bhqk', qb, kb,
                       preferred_element_type=jnp.float32) * SCALE
        mask = jnp.tril(jnp.ones((T, T), bool))
        s = jnp.where(mask[None, None], s, -1e30)
        p = jnp.exp(s - s.max(-1, keepdims=True))
        p = p / p.sum(-1, keepdims=True)
        o = jnp.einsum('bhqk,bkhd->bqhd', p.astype(jnp.bfloat16), vb,
                       preferred_element_type=jnp.float32)
        return o.astype(jnp.bfloat16)

    y1 = attn(q1, k1, v)
    y2 = attn(q2, k2, v)
    lam1 = jnp.exp(jnp.sum(lq1 * lk1)).astype(jnp.bfloat16)
    lam2 = jnp.exp(jnp.sum(lq2 * lk2)).astype(jnp.bfloat16)
    lam_full = lam1 - lam2 + LAMBDA_INIT
    y = (y1 - lam_full * y2).reshape(B, T, D_EXP)
    # c_proj as bf16 matmul with f32 accumulation (same semantics as the kernel)
    out = jnp.dot(y, Wproj.T.astype(jnp.bfloat16), preferred_element_type=jnp.float32)
    return y, out


# --------------------------------- main -------------------------------------
if __name__ == "__main__":
    key = jax.random.PRNGKey(0)
    ks = jax.random.split(key, 8)

    def bf16_round(a):   # model runs its matmuls in bf16; keep test inputs bf16-exact
        return a.astype(jnp.bfloat16).astype(jnp.float32)

    x = bf16_round(jax.random.normal(ks[0], (B, T, D_MODEL), jnp.float32))

    bound = 1.0 / math.sqrt(D_MODEL)
    Wq = bf16_round(jax.random.uniform(ks[1], (N_HEADS * HEAD_DIM, D_MODEL),
                                       jnp.float32, -bound, bound))
    Wk = bf16_round(jax.random.uniform(ks[2], (N_HEADS * HEAD_DIM, D_MODEL),
                                       jnp.float32, -bound, bound))
    Wv = bf16_round(jax.random.uniform(ks[3], (N_HEADS * HEAD_DIM, D_MODEL),
                                       jnp.float32, -bound, bound))
    Wproj = jnp.zeros((D_MODEL, D_EXP), jnp.float32)   # c_proj.weight.data.zero_() per module

    lq1 = 0.1 * jax.random.normal(ks[4], (HD2,), jnp.float32)
    lk1 = 0.1 * jax.random.normal(ks[5], (HD2,), jnp.float32)
    lq2 = 0.1 * jax.random.normal(ks[6], (HD2,), jnp.float32)
    lk2 = 0.1 * jax.random.normal(ks[7], (HD2,), jnp.float32)

    # rotary tables (computed in f32, rounded through bf16 like the torch cache)
    inv_freq = 1.0 / (10000.0 ** (jnp.arange(0, HEAD_DIM, 2, dtype=jnp.float32) / HEAD_DIM))
    t = jnp.arange(T, dtype=jnp.float32)
    freqs = jnp.outer(t, inv_freq)                     # (T, HD2)
    cos = jnp.cos(freqs).astype(jnp.bfloat16).astype(jnp.float32)
    sin = jnp.sin(freqs).astype(jnp.bfloat16).astype(jnp.float32)

    params = prepare_params(Wq, Wk, Wv, Wproj, cos, sin, lq1, lk1, lq2, lk2)
    y_pre, out = diff_attention(x, params)
    jax.block_until_ready((y_pre, out))

    y_ref, out_ref = reference(x, Wq, Wk, Wv, Wproj, cos, sin, lq1, lk1, lq2, lk2)

    assert jnp.allclose(y_pre, y_ref.astype(jnp.float32),
                        atol=2e-2, rtol=2e-2), "pre-projection output mismatch"
    assert jnp.allclose(out, out_ref, atol=2e-2, rtol=2e-2), "final output mismatch"

    print("KERNEL_OK")
</pallas_src>

<mosaic_0001>
module attributes {stable_mosaic.version = 11 : i64} {
  func.func @diff_attn_kernel(%arg0: i32, %arg1: memref<32x64xbf16, #tpu.memory_space<vmem>>, %arg2: memref<64x384xbf16, #tpu.memory_space<vmem>>, %arg3: memref<552x128xbf16, #tpu.memory_space<vmem>>, %arg4: memref<64x128xf32, #tpu.memory_space<vmem>>) attributes {dimension_semantics = [#tpu.dimension_semantics<arbitrary>], iteration_bounds = array<i64: 1>, scalar_prefetch = 0 : i64, scratch_operands = 0 : i64, tpu.core_type = #tpu.core_type<tc>, window_params = [{pipeline_mode = #tpu.pipeline_mode<synchronous>, transform_indices = @transform_0, window_bounds = array<i64: 32, 64>}, {pipeline_mode = #tpu.pipeline_mode<synchronous>, transform_indices = @transform_1, window_bounds = array<i64: 64, 384>}, {pipeline_mode = #tpu.pipeline_mode<synchronous>, transform_indices = @transform_2, window_bounds = array<i64: 552, 128>}, {pipeline_mode = #tpu.pipeline_mode<synchronous>, transform_indices = @transform_3, window_bounds = array<i64: 64, 128>}]} {
    %c0 = arith.constant 0 : index
    %c0_0 = arith.constant 0 : index
    %0 = vector.load %arg1[%c0, %c0_0] : memref<32x64xbf16, #tpu.memory_space<vmem>>, vector<32x64xbf16>
    %c0_1 = arith.constant 0 : index
    %c0_2 = arith.constant 0 : index
    %1 = vector.load %arg3[%c0_1, %c0_2] : memref<552x128xbf16, #tpu.memory_space<vmem>>, vector<32x128xbf16>
    %2 = arith.extf %1 : vector<32x128xbf16> to vector<32x128xf32>
    %c32 = arith.constant 32 : index
    %c0_3 = arith.constant 0 : index
    %3 = vector.load %arg3[%c32, %c0_3] : memref<552x128xbf16, #tpu.memory_space<vmem>>, vector<128x128xbf16>
    %c160 = arith.constant 160 : index
    %c0_4 = arith.constant 0 : index
    %4 = vector.load %arg3[%c160, %c0_4] : memref<552x128xbf16, #tpu.memory_space<vmem>>, vector<128x128xbf16>
    %c288 = arith.constant 288 : index
    %c0_5 = arith.constant 0 : index
    %5 = vector.load %arg3[%c288, %c0_5] : memref<552x128xbf16, #tpu.memory_space<vmem>>, vector<128x128xbf16>
    %c416 = arith.constant 416 : index
    %c0_6 = arith.constant 0 : index
    %6 = vector.load %arg3[%c416, %c0_6] : memref<552x128xbf16, #tpu.memory_space<vmem>>, vector<64x128xbf16>
    %7 = arith.extf %6 : vector<64x128xbf16> to vector<64x128xf32>
    %c480 = arith.constant 480 : index
    %c0_7 = arith.constant 0 : index
    %8 = vector.load %arg3[%c480, %c0_7] : memref<552x128xbf16, #tpu.memory_space<vmem>>, vector<64x128xbf16>
    %9 = arith.extf %8 : vector<64x128xbf16> to vector<64x128xf32>
    %c544 = arith.constant 544 : index
    %c0_8 = arith.constant 0 : index
    %10 = vector.load %arg3[%c544, %c0_8] : memref<552x128xbf16, #tpu.memory_space<vmem>>, vector<8x128xbf16>
    %11 = arith.extf %10 : vector<8x128xbf16> to vector<8x128xf32>
    %12 = vector.extract_strided_slice %11 {offsets = [0, 0], sizes = [4, 128], strides = [1, 1]} : vector<8x128xf32> to vector<4x128xf32>
    %13 = vector.extract_strided_slice %11 {offsets = [4, 0], sizes = [4, 128], strides = [1, 1]} : vector<8x128xf32> to vector<4x128xf32>
    %c0_9 = arith.constant 0 : index
    %c0_10 = arith.constant 0 : index
    %14 = vector.load %arg2[%c0_9, %c0_10] : memref<64x384xbf16, #tpu.memory_space<vmem>>, vector<64x384xbf16>
    %cst = arith.constant dense<0.000000e+00> : vector<32x384xf32>
    %15 = tpu.matmul %0, %14, %cst {dimension_numbers = #tpu.dot_dimension_numbers<[1], [0], [0], [1], [0, 0, 1, 1], [], []>} : vector<32x64xbf16>, vector<64x384xbf16>, vector<32x384xf32> -> vector<32x384xf32>
    %16 = vector.extract_strided_slice %15 {offsets = [0, 0], sizes = [32, 128], strides = [1, 1]} : vector<32x384xf32> to vector<32x128xf32>
    %17 = vector.extract_strided_slice %15 {offsets = [0, 128], sizes = [32, 128], strides = [1, 1]} : vector<32x384xf32> to vector<32x128xf32>
    %18 = vector.extract_strided_slice %15 {offsets = [0, 256], sizes = [32, 128], strides = [1, 1]} : vector<32x384xf32> to vector<32x128xf32>
    %19 = tpu.concatenate %16, %17 in 0 : vector<32x128xf32>, vector<32x128xf32> -> vector<64x128xf32>
    %20 = arith.mulf %19, %19 : vector<64x128xf32>
    %21 = arith.truncf %20 : vector<64x128xf32> to vector<64x128xbf16>
    %cst_11 = arith.constant dense<0.000000e+00> : vector<64x128xf32>
    %22 = tpu.matmul %21, %3, %cst_11 {dimension_numbers = #tpu.dot_dimension_numbers<[1], [0], [0], [1], [0, 0, 1, 1], [], []>} : vector<64x128xbf16>, vector<128x128xbf16>, vector<64x128xf32> -> vector<64x128xf32>
    %cst_12 = arith.constant 1.1920929E-7 : f32
    %23 = vector.broadcast %cst_12 : f32 to vector<64x128xf32>
    %24 = arith.addf %22, %23 : vector<64x128xf32>
    %25 = math.rsqrt %24 : vector<64x128xf32>
    %26 = arith.mulf %19, %25 : vector<64x128xf32>
    %27 = arith.mulf %26, %7 : vector<64x128xf32>
    %c64_i32 = arith.constant 64 : i32
    %28 = tpu.dynamic_rotate %26 by %c64_i32 dim 1 : vector<64x128xf32>, i32 -> vector<64x128xf32>
    %29 = arith.mulf %28, %9 : vector<64x128xf32>
    %30 = arith.addf %27, %29 : vector<64x128xf32>
    %31 = vector.extract_strided_slice %30 {offsets = [0, 0], sizes = [32, 128], strides = [1, 1]} : vector<64x128xf32> to vector<32x128xf32>
    %32 = arith.truncf %31 : vector<32x128xf32> to vector<32x128xbf16>
    %33 = vector.extract_strided_slice %30 {offsets = [32, 0], sizes = [32, 128], strides = [1, 1]} : vector<64x128xf32> to vector<32x128xf32>
    %34 = vector.extract_strided_slice %12 {offsets = [0, 0], sizes = [1, 128], strides = [1, 1]} : vector<4x128xf32> to vector<1x128xf32>
    %35 = vector.shape_cast %34 : vector<1x128xf32> to vector<128xf32>
    %36 = vector.shape_cast %35 : vector<128xf32> to vector<1x128xf32>
    %37 = vector.broadcast %36 : vector<1x128xf32> to vector<32x128xf32>
    %38 = arith.mulf %33, %37 : vector<32x128xf32>
    %39 = vector.extract_strided_slice %12 {offsets = [1, 0], sizes = [1, 128], strides = [1, 1]} : vector<4x128xf32> to vector<1x128xf32>
    %40 = vector.shape_cast %39 : vector<1x128xf32> to vector<128xf32>
    %41 = vector.shape_cast %40 : vector<128xf32> to vector<1x128xf32>
    %42 = vector.broadcast %41 : vector<1x128xf32> to vector<32x128xf32>
    %43 = arith.mulf %33, %42 : vector<32x128xf32>
    %44 = vector.extract_strided_slice %12 {offsets = [2, 0], sizes = [1, 128], strides = [1, 1]} : vector<4x128xf32> to vector<1x128xf32>
    %45 = vector.shape_cast %44 : vector<1x128xf32> to vector<128xf32>
    %46 = vector.shape_cast %45 : vector<128xf32> to vector<1x128xf32>
    %47 = vector.broadcast %46 : vector<1x128xf32> to vector<32x128xf32>
    %48 = arith.mulf %33, %47 : vector<32x128xf32>
    %49 = vector.extract_strided_slice %12 {offsets = [3, 0], sizes = [1, 128], strides = [1, 1]} : vector<4x128xf32> to vector<1x128xf32>
    %50 = vector.shape_cast %49 : vector<1x128xf32> to vector<128xf32>
    %51 = vector.shape_cast %50 : vector<128xf32> to vector<1x128xf32>
    %52 = vector.broadcast %51 : vector<1x128xf32> to vector<32x128xf32>
    %53 = arith.mulf %33, %52 : vector<32x128xf32>
    %54 = tpu.concatenate %38, %43, %48, %53 in 0 : vector<32x128xf32>, vector<32x128xf32>, vector<32x128xf32>, vector<32x128xf32> -> vector<128x128xf32>
    %55 = arith.truncf %54 : vector<128x128xf32> to vector<128x128xbf16>
    %cst_13 = arith.constant dense<0.000000e+00> : vector<32x128xf32>
    %56 = tpu.matmul %32, %55, %cst_13 {dimension_numbers = #tpu.dot_dimension_numbers<[1], [1], [0], [0], [0, 0, 1, 0], [], []>} : vector<32x128xbf16>, vector<128x128xbf16>, vector<32x128xf32> -> vector<32x128xf32>
    %57 = arith.addf %56, %2 : vector<32x128xf32>
    %cst_14 = arith.constant dense<0xFF800000> : vector<32xf32>
    %58 = vector.multi_reduction <maximumf>, %57, %cst_14 [1] : vector<32x128xf32> to vector<32xf32>
    %59 = vector.shape_cast %58 : vector<32xf32> to vector<32x1xf32>
    %60 = vector.broadcast %59 : vector<32x1xf32> to vector<32x128xf32>
    %61 = arith.subf %57, %60 : vector<32x128xf32>
    %62 = math.exp %61 : vector<32x128xf32>
    %63 = arith.truncf %62 : vector<32x128xf32> to vector<32x128xbf16>
    %cst_15 = arith.constant dense<0.000000e+00> : vector<32x128xf32>
    %64 = tpu.matmul %63, %4, %cst_15 {dimension_numbers = #tpu.dot_dimension_numbers<[1], [0], [0], [1], [0, 0, 1, 1], [], []>} : vector<32x128xbf16>, vector<128x128xbf16>, vector<32x128xf32> -> vector<32x128xf32>
    %65 = tpu.reciprocal %64 {approx = true} : vector<32x128xf32> -> vector<32x128xf32>
    %66 = arith.mulf %62, %65 : vector<32x128xf32>
    %67 = arith.truncf %66 : vector<32x128xf32> to vector<32x128xbf16>
    %68 = vector.extract_strided_slice %13 {offsets = [0, 0], sizes = [1, 128], strides = [1, 1]} : vector<4x128xf32> to vector<1x128xf32>
    %69 = vector.shape_cast %68 : vector<1x128xf32> to vector<128xf32>
    %70 = vector.shape_cast %69 : vector<128xf32> to vector<1x128xf32>
    %71 = vector.broadcast %70 : vector<1x128xf32> to vector<32x128xf32>
    %72 = arith.mulf %18, %71 : vector<32x128xf32>
    %73 = vector.extract_strided_slice %13 {offsets = [1, 0], sizes = [1, 128], strides = [1, 1]} : vector<4x128xf32> to vector<1x128xf32>
    %74 = vector.shape_cast %73 : vector<1x128xf32> to vector<128xf32>
    %75 = vector.shape_cast %74 : vector<128xf32> to vector<1x128xf32>
    %76 = vector.broadcast %75 : vector<1x128xf32> to vector<32x128xf32>
    %77 = arith.mulf %18, %76 : vector<32x128xf32>
    %78 = vector.extract_strided_slice %13 {offsets = [2, 0], sizes = [1, 128], strides = [1, 1]} : vector<4x128xf32> to vector<1x128xf32>
    %79 = vector.shape_cast %78 : vector<1x128xf32> to vector<128xf32>
    %80 = vector.shape_cast %79 : vector<128xf32> to vector<1x128xf32>
    %81 = vector.broadcast %80 : vector<1x128xf32> to vector<32x128xf32>
    %82 = arith.mulf %18, %81 : vector<32x128xf32>
    %83 = vector.extract_strided_slice %13 {offsets = [3, 0], sizes = [1, 128], strides = [1, 1]} : vector<4x128xf32> to vector<1x128xf32>
    %84 = vector.shape_cast %83 : vector<1x128xf32> to vector<128xf32>
    %85 = vector.shape_cast %84 : vector<128xf32> to vector<1x128xf32>
    %86 = vector.broadcast %85 : vector<1x128xf32> to vector<32x128xf32>
    %87 = arith.mulf %18, %86 : vector<32x128xf32>
    %88 = tpu.concatenate %72, %77, %82, %87 in 0 : vector<32x128xf32>, vector<32x128xf32>, vector<32x128xf32>, vector<32x128xf32> -> vector<128x128xf32>
    %89 = arith.truncf %88 : vector<128x128xf32> to vector<128x128xbf16>
    %cst_16 = arith.constant dense<0.000000e+00> : vector<32x128xf32>
    %90 = tpu.matmul %67, %89, %cst_16 {dimension_numbers = #tpu.dot_dimension_numbers<[1], [0], [0], [1], [0, 0, 1, 1], [], []>} : vector<32x128xbf16>, vector<128x128xbf16>, vector<32x128xf32> -> vector<32x128xf32>
    %91 = arith.truncf %90 : vector<32x128xf32> to vector<32x128xbf16>
    %92 = arith.extf %91 : vector<32x128xbf16> to vector<32x128xf32>
    %c0_17 = arith.constant 0 : index
    %c0_18 = arith.constant 0 : index
    %93 = vector.load %arg4[%c0_17, %c0_18] : memref<64x128xf32, #tpu.memory_space<vmem>>, vector<32x128xf32>
    tpu.vector_store %arg4[%c0_17, %c0_18], %92 {strides = array<i32>} : memref<64x128xf32, #tpu.memory_space<vmem>>, vector<32x128xf32>,
    %cst_19 = arith.constant dense<0.000000e+00> : vector<32x128xf32>
    %94 = tpu.matmul %91, %5, %cst_19 {dimension_numbers = #tpu.dot_dimension_numbers<[1], [0], [0], [1], [0, 0, 1, 1], [], []>} : vector<32x128xbf16>, vector<128x128xbf16>, vector<32x128xf32> -> vector<32x128xf32>
    %c32_20 = arith.constant 32 : index
    %c0_21 = arith.constant 0 : index
    %95 = vector.load %arg4[%c32_20, %c0_21] : memref<64x128xf32, #tpu.memory_space<vmem>>, vector<32x128xf32>
    tpu.vector_store %arg4[%c32_20, %c0_21], %94 {strides = array<i32>} : memref<64x128xf32, #tpu.memory_space<vmem>>, vector<32x128xf32>,
    return
  }
  func.func @transform_0(%arg0: i32) -> (i32, i32) {
    %c0_i32 = arith.constant 0 : i32
    %c0_i32_0 = arith.constant 0 : i32
    %c0_i32_1 = arith.constant 0 : i32
    return %c0_i32, %c0_i32_0 : i32, i32
  }
  func.func @transform_1(%arg0: i32) -> (i32, i32) {
    %c0_i32 = arith.constant 0 : i32
    %c0_i32_0 = arith.constant 0 : i32
    %c0_i32_1 = arith.constant 0 : i32
    return %c0_i32, %c0_i32_0 : i32, i32
  }
  func.func @transform_2(%arg0: i32) -> (i32, i32) {
    %c0_i32 = arith.constant 0 : i32
    %c0_i32_0 = arith.constant 0 : i32
    %c0_i32_1 = arith.constant 0 : i32
    return %c0_i32, %c0_i32_0 : i32, i32
  }
  func.func @transform_3(%arg0: i32) -> (i32, i32) {
    %c0_i32 = arith.constant 0 : i32
    %c0_i32_0 = arith.constant 0 : i32
    %c0_i32_1 = arith.constant 0 : i32
    return %c0_i32, %c0_i32_0 : i32, i32
  }
}

</mosaic_0001>

<bundles_post_ra>
// kernel: tpu_custom_call.1
= control target key start
LH: loop header
LB: loop body
LE: loop exit
PB: predicated region body
PF: predicated region fallthrough
CT: control target
= control target key end

     0   :  { %8 = vsyncpa [#allocation3], 0  ;;  %s1598_s0 = inlined_call_operand.hbm [shape: bf16[32,64], index: 0, kind: input, shape index: {}]   ;;  %s1599_s1 = inlined_call_operand.hbm [shape: bf16[64,384], index: 1, kind: input, shape index: {}]   ;;  %s1600_s2 = inlined_call_operand.hbm [shape: bf16[552,128], index: 2, kind: input, shape index: {}]   ;;  %s1601_s3 = inlined_call_operand.hbm [shape: f32[64,128], index: 3, kind: output, shape index: {}]  }
   0x1   :  { %9 = vsyncpa [#allocation6], 0 }
   0x2   :  { %10 = vsyncpa [#allocation4], 0  ;;  %s1405_s12 = smov [#allocation5]  }
   0x3   :  { %s28_s13 = sshll.u32 %s1405_s12, 4  ;;  %s29_s13 = int_to_ptr.vmem [resolvable:$true] %s28_s13 }
   0x4   :  { %s1327_s14 = scalar_lea.vmem %s29_s13, 1536  ;;  %p1332_p1 = scmp.lt.s32.totalorder %s29_s13, %s29_s13 }
   0x5   :  { %p1328_p0 = scmp.ne.s32.totalorder %s29_s13, %s1327_s14  ;;  %p1333_p2 = scmp.lt.s32.totalorder %s1327_s14, %s1327_s14 }
   0x7   :  { %p1334_p3 = por %p1333_p2, %p1332_p1 }
   0x9   :  { %p1335_p4 = pnand %p1334_p3, %p1328_p0 }
   0xb   :  { %1338 = shalt.err (!%p1335_p4)
}
   0xc   :  { %s1406_s15 = smov 192   ;;  %s1407_s16 = smov 12  }
   0xd   :  { %34 = dma.hbm_to_vmem [thread:$0]  %s1599_s1, 1536, %s29_s13, [#allocation6], %s1406_s15, %s1406_s15, %s1407_s16  }
   0xe   :  { %s1408_s19 = smov [#allocation2]  }
   0xf   :  { %s16_s20 = sshll.u32 %s1408_s19, 4  ;;  %s17_s20 = int_to_ptr.vmem [resolvable:$true] %s16_s20 }
  0x10   :  { %s1347_s21 = scalar_lea.vmem %s17_s20, 256  ;;  %p1352_p6 = scmp.lt.s32.totalorder %s17_s20, %s17_s20 }
  0x11   :  { %p1348_p5 = scmp.ne.s32.totalorder %s17_s20, %s1347_s21  ;;  %p1353_p7 = scmp.lt.s32.totalorder %s1347_s21, %s1347_s21 }
  0x13   :  { %p1354_p8 = por %p1353_p7, %p1352_p6 }
  0x15   :  { %p1355_p9 = pnand %p1354_p8, %p1348_p5 }
  0x17   :  { %1358 = shalt.err (!%p1355_p9)
}
  0x18   :  { %s1409_s22 = smov 64   ;;  %s1410_s23 = smov 4  }
  0x19   :  { %22 = dma.hbm_to_vmem [thread:$0]  %s1598_s0, 256, %s17_s20, [#allocation3], %s1409_s22, %s1409_s22, %s1410_s23  }
  0x1a   :  { %s1411_s26 = smov [#allocation7]  }
  0x1b   :  { %s40_s1 = sshll.u32 %s1411_s26, 4  ;;  %s41_s1 = int_to_ptr.vmem [resolvable:$true] %s40_s1 }
  0x1c   :  { %s1367_s27 = scalar_lea.vmem %s41_s1, 4416  ;;  %p1372_p11 = scmp.lt.s32.totalorder %s41_s1, %s41_s1 }
  0x1d   :  { %p1368_p10 = scmp.ne.s32.totalorder %s41_s1, %s1367_s27  ;;  %p1373_p12 = scmp.lt.s32.totalorder %s1367_s27, %s1367_s27 }
  0x1f   :  { %p1374_p13 = por %p1373_p12, %p1372_p11 }
  0x21   :  { %p1375_p0 = pnand %p1374_p13, %p1368_p10 }
  0x23   :  { %1378 = shalt.err (!%p1375_p0)
}
  0x24   :  { %46 = dma.hbm_to_vmem [thread:$0]  %s1600_s2, 4416, %s41_s1, [#allocation6], %s1409_s22, %s1409_s22, %s1410_s23  }
  0x25   :  { %1399 = dma.done.wait [#allocation3], 256  }
  0x26   :  { %1400 = vsyncadd [#allocation3], 4294967040 }
  0x27   :  { %1401 = dma.done.wait [#allocation6], 5952  }
  0x28   :  { %1402 = vsyncadd [#allocation6], 4294961344  ;;  %v1412_v0 = vmov 0   ;;  %v1245_v1 = vld [vmem:[#allocation5 + $0x4c] ss:$12 sps:$4 sm:$0xff]   ;;  %v1257_v6 = vld [vmem:[#allocation2] sm:$0xff]  }
  0x29   :  { %280 = vmatprep.mubr.bf16.mxu0 %v1412_v0  ;;  %v1247_v2 = vld [vmem:[#allocation5 + $0x48] ss:$12 sps:$4 sm:$0xff]   ;;  %256 = vmatprep.subr.bf16.mxu0 %v1245_v1  ;;  %v1250_v4 = vld [vmem:[#allocation5 + $0x30] ss:$12 sps:$4 sm:$0xff]   ;;  %vm241_vm0 = vcmask 523264   ;;  %v1260_v11 = vld [vmem:[#allocation7 + $0x40] sm:$0xff]  }
  0x2a   :  { %v1248_v3 = vld [vmem:[#allocation5 + $0x34] ss:$12 sps:$4 sm:$0xff]   ;;  %257 = vmatpush1.bf16.msra.mxu0 %v1247_v2  ;;  %v1251_v5 = vld [vmem:[#allocation5 + $0x1c] ss:$12 sps:$4 sm:$0xff]   ;;  %v1253_v7 = vld [vmem:[#allocation5 + $0x18] ss:$12 sps:$4 sm:$0xff]   ;;  %1126 = vmatprep.mubr.msk.bf16.mxu1 %vm241_vm0, %v1257_v6 }
  0x2b   :  { %258 = vmatprep.subr.bf16.mxu0 %v1248_v3  ;;  %v1254_v8 = vld [vmem:[#allocation5 + $0x4] ss:$12 sps:$4 sm:$0xff]   ;;  %v1256_v9 = vld [vmem:[#allocation5] ss:$12 sps:$4 sm:$0xff]   ;;  %v1261_v12 = vld [vmem:[#allocation7 + $0x38] sm:$0xff]   ;;  %s1413_s0 = smov [#allocation8]  }
  0x2c   :  { %v1259_v10 = vld [vmem:[#allocation7 + $0x48] sm:$0xff]   ;;  %v1451_v13 = vld [vmem:[#allocation2 + $0x8] sm:$0xff]   ;;  %v1262_v14 = vld [vmem:[#allocation7 + $0x30] sm:$0xff]   ;;  %s956_s2 = sshll.u32 %s1413_s0, 4  ;;  %s957_s2 = int_to_ptr.vmem [resolvable:$true] %s956_s2 }
  0x2d   :  { %v1263_v15 = vld [vmem:[#allocation7 + $0x28] sm:$0xff]   ;;  %v1264_v16 = vld [vmem:[#allocation7 + $0x20] sm:$0xff]   ;;  %v1265_v17 = vld [vmem:[#allocation7 + $0x18] sm:$0xff]   ;;  %s1379_s30 = scalar_lea.vmem %s957_s2, 1024  ;;  %p1384_p2 = scmp.lt.s32.totalorder %s957_s2, %s957_s2 }
  0x2e   :  { %259 = vmatpush1.bf16.msra.mxu0 %v1250_v4  ;;  %v1266_v18 = vld [vmem:[#allocation7 + $0x10] sm:$0xff]   ;;  %v1268_v40 = vld [vmem:[#allocation5 + $0x38] ss:$12 sps:$4 sm:$0xff]   ;;  %v1269_v41 = vld [vmem:[#allocation5 + $0x20] ss:$12 sps:$4 sm:$0xff]   ;;  %p1380_p1 = scmp.ne.s32.totalorder %s957_s2, %s1379_s30  ;;  %p1385_p3 = scmp.lt.s32.totalorder %s1379_s30, %s1379_s30 }
  0x2f   :  { %260 = vmatprep.subr.bf16.mxu0 %v1251_v5  ;;  %v1267_v39 = vld [vmem:[#allocation5 + $0x50] ss:$12 sps:$4 sm:$0xff]   ;;  %v1270_v56 = vld [vmem:[#allocation5 + $0x8] ss:$12 sps:$4 sm:$0xff]  }
  0x30   :  { %1118 = vmatprep.subr.bf16.mxu1 %v1267_v39  ;;  %p1386_p4 = por %p1385_p3, %p1384_p2 }
  0x31   :  { %1119 = vmatpush3.bf16.msra.mxu1 %v1267_v39 }
  0x32   :  { %261 = vmatpush1.bf16.msra.mxu0 %v1253_v7  ;;  %1120 = vmatprep.subr.bf16.mxu1 %v1268_v40  ;;  %p1387_p5 = pnand %p1386_p4, %p1380_p1 }
  0x33   :  { %262 = vmatprep.subr.bf16.mxu0 %v1254_v8 }
  0x35   :  { %1121 = vmatpush3.bf16.msra.mxu1 %v1268_v40 }
  0x36   :  { %263 = vmatpush1.bf16.msra.mxu0 %v1256_v9  ;;  %1122 = vmatprep.subr.bf16.mxu1 %v1269_v41 }
  0x37   :  { %1130 = vmatprep.subr.bf16.mxu0 %v1259_v10 }
  0x39   :  { %983 = vmatmul.mubr.msk.bf16.vlgmr.msra.gmra.mxu0 %vm241_vm0, %v1257_v6  ;;  %1123 = vmatpush3.bf16.msra.mxu1 %v1269_v41 }
  0x3a   :  { %290 = vmatprep.mubr.bf16.mxu0 %v1412_v0  ;;  %1131 = vmatpush3.bf16.msra.mxu0 %v1259_v10 }
  0x3b   :  { %1132 = vmatprep.subr.bf16.mxu0 %v1260_v11  ;;  %1124 = vmatprep.subr.bf16.mxu1 %v1270_v56 }
  0x3d   :  { %1125 = vmatpush3.bf16.msra.mxu1 %v1270_v56 }
  0x3e   :  { %1133 = vmatpush3.bf16.msra.mxu0 %v1260_v11  ;;  %v1271_v11 = vld [vmem:[#allocation7 + $0x88] sm:$0xff]  }
  0x3f   :  { %1134 = vmatprep.subr.bf16.mxu0 %v1261_v12 }
  0x40   :  { %1127 = vmatmul.mubr.msk.bf16.vlgmr.msra.gmra.mxu1 %vm241_vm0, %v1451_v13 }
  0x41   :  { %984 = vmatmul.mubr.msk.bf16.gmra.mxu0 %vm241_vm0, %v1451_v13  ;;  %v1273_v13 = vld [vmem:[#allocation7 + $0x78] sm:$0xff]  }
  0x42   :  { %1135 = vmatpush3.bf16.msra.mxu0 %v1261_v12  ;;  %v1272_v12 = vld [vmem:[#allocation7 + $0x80] sm:$0xff]  }
  0x43   :  { %1136 = vmatprep.subr.bf16.mxu0 %v1262_v14 }
  0x46   :  { %1137 = vmatpush3.bf16.msra.mxu0 %v1262_v14  ;;  %v1274_v14 = vld [vmem:[#allocation7 + $0x70] sm:$0xff]  }
  0x47   :  { %1138 = vmatprep.subr.bf16.mxu0 %v1263_v15 }
  0x4a   :  { %1139 = vmatpush3.bf16.msra.mxu0 %v1263_v15  ;;  %v1275_v15 = vld [vmem:[#allocation7 + $0x68] sm:$0xff]  }
  0x4b   :  { %1140 = vmatprep.subr.bf16.mxu0 %v1264_v16 }
  0x4e   :  { %1141 = vmatpush3.bf16.msra.mxu0 %v1264_v16  ;;  %v1276_v16 = vld [vmem:[#allocation7 + $0x60] sm:$0xff]  }
  0x4f   :  { %1142 = vmatprep.subr.bf16.mxu0 %v1265_v17 }
  0x52   :  { %1143 = vmatpush3.bf16.msra.mxu0 %v1265_v17  ;;  %v1277_v17 = vld [vmem:[#allocation7 + $0x58] sm:$0xff]  }
  0x53   :  { %1144 = vmatprep.subr.bf16.mxu0 %v1266_v18 }
  0x56   :  { %1145 = vmatpush3.bf16.msra.mxu0 %v1266_v18  ;;  %v1278_v18 = vld [vmem:[#allocation7 + $0x50] sm:$0xff]  }
  0x57   :  { %1174 = vmatprep.subr.bf16.mxu0 %v1271_v11 }
  0xf9   :  { %v1455_v19 = vpop.f32.mrf.mxu0 }
  0xfa   :  { %v350_v22 = vmul.f32 %v1455_v19, %v1455_v19 }
  0xfb   :  { %v1457_v20 = vpop.f32.mrf.mxu0 }
  0xfc   :  { %v354_v32 = vmul.f32 %v1457_v20, %v1457_v20 }
  0xfd   :  { %v1459_v21 = vpop.f32.mrf.mxu0 }
  0xfe   :  { %v351_v23 = vmul.f32 %v1459_v21, %v1459_v21 }
  0xff   :  { %v1465_v24 = vpop.f32.mrf.mxu0 }
 0x100   :  { %v358_v25 = vpack.c.bf16 %v351_v23, %v350_v22  ;;  %v355_v28 = vmul.f32 %v1465_v24, %v1465_v24  ;;  %v149_v23 = vld [vmem:[#allocation7 + $0x110] sm:$0xf] }
 0x101   :  { %v1467_v26 = vpop.f32.mrf.mxu0 }
 0x102   :  { %1146 = vmatprep.mubr.bf16.mxu0 %v358_v25  ;;  %v352_v30 = vmul.f32 %v1467_v26, %v1467_v26  ;;  %v360_v34 = vpack.c.bf16 %v355_v28, %v354_v32  ;;  %v1521_v25 = vld [vmem:[#allocation7 + $0xd8] sm:$0xff]   ;;  %v1052_v28 = vld [vmem:[#allocation7 + $0xd0] sm:$0xff]  }
 0x103   :  { %v294_v27 = vpop.f32.mrf.mxu0 }
 0x104   :  { %v356_v37 = vmul.f32 %v294_v27, %v294_v27 }
 0x105   :  { %v1471_v29 = vpop.f32.mrf.mxu0 }
 0x106   :  { %v353_v31 = vmul.f32 %v1471_v29, %v1471_v29 }
 0x107   :  { %v298_v35 = vpop.f32.mrf.mxu0 }
 0x108   :  { %v359_v33 = vpack.c.bf16 %v353_v31, %v352_v30  ;;  %v357_v36 = vmul.f32 %v298_v35, %v298_v35  ;;  %v1523_v30 = vunpack.c.l.bf16 %v149_v23 }
 0x10a   :  { %1147 = vmatmul.mubr.bf16.vlgmr.msra.gmra.mxu0 %v359_v33  ;;  %v361_v38 = vpack.c.bf16 %v357_v36, %v356_v37  ;;  %v1025_v33 = vunpack.c.l.bf16 %v1521_v25 }
 0x10b   :  { %1150 = vmatprep.mubr.bf16.mxu0 %v360_v34  ;;  %1175 = vmatpush3.bf16.msra.mxu0 %v1271_v11 }
 0x10c   :  { %1176 = vmatprep.subr.bf16.mxu0 %v1272_v12 }
 0x10f   :  { %1177 = vmatpush3.bf16.msra.mxu0 %v1272_v12 }
 0x110   :  { %1178 = vmatprep.subr.bf16.mxu0 %v1273_v13 }
 0x112   :  { %1151 = vmatmul.mubr.bf16.gmra.mxu0 %v361_v38 }
 0x113   :  { %1179 = vmatpush3.bf16.msra.mxu0 %v1273_v13 }
 0x114   :  { %1180 = vmatprep.subr.bf16.mxu0 %v1274_v14 }
 0x117   :  { %1181 = vmatpush3.bf16.msra.mxu0 %v1274_v14 }
 0x118   :  { %1182 = vmatprep.subr.bf16.mxu0 %v1275_v15 }
 0x11b   :  { %1183 = vmatpush3.bf16.msra.mxu0 %v1275_v15 }
 0x11c   :  { %1184 = vmatprep.subr.bf16.mxu0 %v1276_v16 }
 0x11f   :  { %1185 = vmatpush3.bf16.msra.mxu0 %v1276_v16 }
 0x120   :  { %1186 = vmatprep.subr.bf16.mxu0 %v1277_v17 }
 0x123   :  { %1187 = vmatpush3.bf16.msra.mxu0 %v1277_v17 }
 0x124   :  { %1188 = vmatprep.subr.bf16.mxu0 %v1278_v18 }
 0x127   :  { %1189 = vmatpush3.bf16.msra.mxu0 %v1278_v18 }
 0x1ca   :  { %v1148_v42 = vpop.f32.mrf.mxu0 }
 0x1cb   :  { %v453_v57 = vadd.f32 1.1920929e-07, %v1148_v42 }
 0x1cc   :  { %v444_v43 = vpop.f32.mrf.mxu0 }
 0x1cd   :  { %v445_v50 = vadd.f32 1.1920929e-07, %v444_v43 }
 0x1ce   :  { %v1149_v44 = vpop.f32.mrf.mxu0 }
 0x1cf   :  { %v456_v58 = vadd.f32 1.1920929e-07, %v1149_v44  ;;  %v1056_v44 = vld [vmem:[#allocation7 + $0xf0] sm:$0xff]  }
 0x1d0   :  { %v447_v45 = vpop.f32.mrf.mxu0  ;;  %v1037_v56 = vunpack.c.l.bf16 %v1056_v44 }
 0x1d1   :  { %v448_v54 = vadd.f32 1.1920929e-07, %v447_v45 }
 0x1d2   :  { %v1152_v46 = vpop.f32.mrf.mxu0 }
 0x1d3   :  { %v469_v47 = vadd.f32 1.1920929e-07, %v1152_v46  ;;  %v1022_v46 = vunpack.c.h.bf16 %v1052_v28 }
 0x1d4   :  { %v460_v48 = vpop.f32.mrf.mxu0 }
 0x1d5   :  { %1287 = vrsqrt.f32 %v469_v47  ;;  %v461_v49 = vadd.f32 1.1920929e-07, %v460_v48  ;;  %v1026_v47 = vunpack.c.h.bf16 %v1521_v25 }
 0x1d6   :  { %v1153_v51 = vpop.f32.mrf.mxu0 }
 0x1d7   :  { %1289 = vrsqrt.f32 %v461_v49  ;;  %v472_v52 = vadd.f32 1.1920929e-07, %v1153_v51 }
 0x1d8   :  { %v463_v53 = vpop.f32.mrf.mxu0 }
 0x1d9   :  { %1291 = vrsqrt.f32 %v472_v52  ;;  %v464_v55 = vadd.f32 1.1920929e-07, %v463_v53 }
 0x1da   :  { %1293 = vrsqrt.f32 %v445_v50 }
 0x1db   :  { %1295 = vrsqrt.f32 %v464_v55 }
 0x1dc   :  { %1297 = vrsqrt.f32 %v448_v54  ;;  %v1057_v54 = vld [vmem:[#allocation7 + $0xf8] sm:$0xff]  }
 0x1dd   :  { %1299 = vrsqrt.f32 %v453_v57 }
 0x1de   :  { %1301 = vrsqrt.f32 %v456_v58 }
 0x1e2   :  { %v1288_v59 = vpop.eup %1287 }
 0x1e3   :  { %v1481_v60 = vmul.f32 %v1288_v59, %v294_v27 }
 0x1e4   :  { %v1290_v61 = vpop.eup %1289 }
 0x1e5   :  { %511 = vrot.lane.b32.xlu0 %v1481_v60, %s1409_s22  ;;  %v1486_v62 = vmul.f32 %v1290_v61, %v1457_v20  ;;  %v1055_v20 = vld [vmem:[#allocation7 + $0xe8] sm:$0xff]  }
 0x1e6   :  { %v1292_v63 = vpop.eup %1291  ;;  %v1033_v27 = vunpack.c.l.bf16 %v1055_v20  ;;  %v1034_v41 = vunpack.c.h.bf16 %v1055_v20 }
 0x1e7   :  { %v1294_v0 = vpop.eup %1293  ;;  %507 = vrot.lane.b32.xlu1 %v1486_v62, %s1409_s22  ;;  %v1490_v1 = vmul.f32 %v1292_v63, %v298_v35  ;;  %v1021_v35 = vunpack.c.l.bf16 %v1052_v28 }
 0x1e8   :  { %v1296_v2 = vpop.eup %1295  ;;  %v1500_v5 = vmul.f32 %v1294_v0, %v1455_v19  ;;  %v533_v19 = vlaneseq  ;;  %v497_v40 = vmul.f32 %v1033_v27, %v1481_v60 }
 0x1e9   :  { %513 = vrot.lane.b32.xlu0 %v1490_v1, %s1409_s22  ;;  %v1495_v3 = vmul.f32 %v1296_v2, %v1465_v24  ;;  %v1298_v4 = vpop.eup %1297  ;;  %v1054_v24 = vld [vmem:[#allocation7 + $0xe0] sm:$0xff]   ;;  %v498_v60 = vmul.f32 %v1034_v41, %v1490_v1 }
 0x1ea   :  { %v1300_v6 = vpop.eup %1299  ;;  %v1505_v7 = vmul.f32 %v1298_v4, %v1459_v21  ;;  %v1059_v21 = vld [vmem:[#allocation7 + $0x108] sm:$0xff]   ;;  %v1519_v22 = vshrl.u32 %v533_v19, 7  ;;  %v1029_v32 = vunpack.c.l.bf16 %v1054_v24  ;;  %v1030_v45 = vunpack.c.h.bf16 %v1054_v24 }
 0x1eb   :  { %509 = vrot.lane.b32.xlu1 %v1495_v3, %s1409_s22  ;;  %v1302_v8 = vpop.eup %1301  ;;  %v1510_v9 = vmul.f32 %v1300_v6, %v1467_v26  ;;  %v1058_v26 = vld [vmem:[#allocation7 + $0x100] sm:$0xff]   ;;  %v1050_v43 = vunpack.c.h.bf16 %v1059_v21  ;;  %v491_v61 = vmul.f32 %v1021_v35, %v1500_v5  ;;  %v1038_v4 = vunpack.c.h.bf16 %v1056_v44 }
 0x1ec   :  { %v1515_v10 = vmul.f32 %v1302_v8, %v1471_v29  ;;  %v1049_v29 = vunpack.c.l.bf16 %v1059_v21  ;;  %v559_v31 = vsub.s32 3, %v1519_v22  ;;  %v1045_v34 = vunpack.c.l.bf16 %v1058_v26 }
 0x1ed   :  { %499 = vrot.lane.b32.xlu0 %v1500_v5, %s1409_s22  ;;  %v551_v37 = vsub.s32 2, %v1519_v22  ;;  %v543_v38 = vsub.s32 1, %v1519_v22  ;;  %v535_v39 = vsub.s32 0, %v1519_v22  ;;  %v495_v50 = vmul.f32 %v1029_v32, %v1486_v62 }
 0x1ee   :  { %v560_v49 = vrot.slane %v1523_v30, %v559_v31  ;;  %v1046_v53 = vunpack.c.h.bf16 %v1058_v26  ;;  %v492_v62 = vmul.f32 %v1022_v46, %v1505_v7  ;;  %v1041_v6 = vunpack.c.l.bf16 %v1057_v54 }
 0x1ef   :  { %501 = vrot.lane.b32.xlu1 %v1505_v7, %s1409_s22  ;;  %v552_v57 = vrot.slane %v1523_v30, %v551_v37  ;;  %v544_v58 = vrot.slane %v1523_v30, %v543_v38  ;;  %v536_v59 = vrot.slane %v1523_v30, %v535_v39  ;;  %v1042_v8 = vunpack.c.h.bf16 %v1057_v54 }
 0x1f0   :  { %v496_v11 = vmul.f32 %v1030_v45, %v1495_v3  ;;  %v769_v25 = vsub.s32 6, %v1519_v22 }
 0x1f1   :  { %503 = vrot.lane.b32.xlu0 %v1510_v9, %s1409_s22 }
 0x1f3   :  { %505 = vrot.lane.b32.xlu1 %v1515_v10, %s1409_s22 }
 0x257   :  { %v512_v36 = vpop.permute.xlu0 %511 }
 0x258   :  { %v521_v42 = vmul.f32 %v1049_v29, %v512_v36 }
 0x259   :  { %v508_v48 = vpop.permute.xlu1 %507 }
 0x25a   :  { %v529_v51 = vadd.f32 %v521_v42, %v497_v40  ;;  %v519_v52 = vmul.f32 %v1045_v34, %v508_v48  ;;  %v493_v48 = vmul.f32 %v1025_v33, %v1510_v9  ;;  %v777_v9 = vsub.s32 7, %v1519_v22 }
 0x25b   :  { %v514_v55 = vpop.permute.xlu0 %513 }
 0x25c   :  { %v527_v63 = vadd.f32 %v519_v52, %v495_v50  ;;  %v522_v0 = vmul.f32 %v1050_v43, %v514_v55  ;;  %v563_v14 = vmul.f32 %v560_v49, %v529_v51  ;;  %v555_v17 = vmul.f32 %v552_v57, %v529_v51 }
 0x25d   :  { %v510_v2 = vpop.permute.xlu1 %509  ;;  %v547_v18 = vmul.f32 %v544_v58, %v529_v51  ;;  %v539_v1 = vmul.f32 %v536_v59, %v529_v51  ;;  %v778_v33 = vrot.slane %v1523_v30, %v777_v9 }
 0x25e   :  { %v530_v12 = vadd.f32 %v522_v0, %v498_v60  ;;  %v520_v13 = vmul.f32 %v1046_v53, %v510_v2  ;;  %v561_v16 = vmul.f32 %v560_v49, %v527_v63  ;;  %v553_v7 = vmul.f32 %v552_v57, %v527_v63 }
 0x25f   :  { %v500_v15 = vpop.permute.xlu0 %499  ;;  %v545_v26 = vmul.f32 %v544_v58, %v527_v63  ;;  %v537_v45 = vmul.f32 %v536_v59, %v527_v63 }
 0x260   :  { %v528_v19 = vadd.f32 %v520_v13, %v496_v11  ;;  %v515_v5 = vmul.f32 %v1037_v56, %v500_v15  ;;  %v564_v20 = vmul.f32 %v560_v49, %v530_v12  ;;  %v556_v21 = vmul.f32 %v552_v57, %v530_v12 }
 0x261   :  { %v502_v23 = vpop.permute.xlu1 %501  ;;  %v548_v24 = vmul.f32 %v544_v58, %v530_v12  ;;  %v540_v27 = vmul.f32 %v536_v59, %v530_v12  ;;  %v753_v56 = vsub.s32 4, %v1519_v22 }
 0x262   :  { %v523_v28 = vadd.f32 %v515_v5, %v491_v61  ;;  %v516_v29 = vmul.f32 %v1038_v4, %v502_v23  ;;  %v572_v3 = vpack.c.bf16 %v564_v20, %v563_v14  ;;  %v562_v31 = vmul.f32 %v560_v49, %v528_v19 }
 0x263   :  { %v504_v32 = vpop.permute.xlu0 %503  ;;  %v570_v34 = vpack.c.bf16 %v556_v21, %v555_v17  ;;  %v554_v35 = vmul.f32 %v552_v57, %v528_v19  ;;  %v568_v36 = vpack.c.bf16 %v548_v24, %v547_v18  ;;  %v546_v37 = vmul.f32 %v544_v58, %v528_v19  ;;  %v1012_v18 = vld [vmem:[#allocation7] sm:$0xff]  }
 0x264   :  { %v524_v38 = vadd.f32 %v516_v29, %v492_v62  ;;  %v517_v39 = vmul.f32 %v1041_v6, %v504_v32  ;;  %1154 = vmatprep.subr.bf16.mxu1 %v572_v3  ;;  %v571_v40 = vpack.c.bf16 %v562_v31, %v561_v16  ;;  %v566_v41 = vpack.c.bf16 %v540_v27, %v539_v1 }
 0x265   :  { %1155 = vmatpush3.bf16.xpose.msra.mxu1 %v572_v3  ;;  %v506_v42 = vpop.permute.xlu1 %505  ;;  %v569_v43 = vpack.c.bf16 %v554_v35, %v553_v7  ;;  %v567_v44 = vpack.c.bf16 %v546_v37, %v545_v26  ;;  %v538_v46 = vmul.f32 %v536_v59, %v528_v19  ;;  %v494_v49 = vmul.f32 %v1026_v47, %v1515_v10  ;;  %v1128_v47 = vpop.f32.mrf.mxu1  ;;  %v1051_v19 = vld [vmem:[#allocation7 + $0x8] sm:$0xff]  }
 0x266   :  { %v518_v50 = vmul.f32 %v1042_v8, %v506_v42  ;;  %1156 = vmatprep.subr.bf16.mxu1 %v571_v40  ;;  %v531_v51 = vpack.c.bf16 %v524_v38, %v523_v28  ;;  %v525_v53 = vadd.f32 %v517_v39, %v493_v48  ;;  %v761_v10 = vsub.s32 5, %v1519_v22 }
 0x267   :  { %v565_v52 = vpack.c.bf16 %v538_v46, %v537_v45  ;;  %v1550_v57 = vpop.f32.mrf.mxu1  ;;  %v1556_v59 = vrot.slane %v1523_v30, %v769_v25  ;;  %v781_v61 = vmul.f32 %v1128_v47, %v778_v33  ;;  %v1560_v0 = vrot.slane %v1523_v30, %v753_v56  ;;  %v1280_v56 = vld [vmem:[#allocation7 + $0xc0] sm:$0xff]  }
 0x268   :  { %v526_v54 = vadd.f32 %v518_v50, %v494_v49  ;;  %1170 = vmatprep.mubr.bf16.mxu1 %v531_v51  ;;  %v1553_v58 = vrot.slane %v1523_v30, %v761_v10  ;;  %v779_v60 = vmul.f32 %v778_v33, %v1550_v57  ;;  %v1013_v1 = vunpack.c.l.bf16 %v1012_v18 }
 0x269   :  { %v1129_v63 = vpop.f32.mrf.mxu1  ;;  %v773_v4 = vmul.f32 %v1128_v47, %v1556_v59  ;;  %v757_v13 = vmul.f32 %v1128_v47, %v1560_v0  ;;  %v1017_v21 = vunpack.c.l.bf16 %v1051_v19  ;;  %v1014_v7 = vunpack.c.h.bf16 %v1012_v18 }
 0x26a   :  { %v532_v55 = vpack.c.bf16 %v526_v54, %v525_v53  ;;  %v782_v62 = vmul.f32 %v1129_v63, %v778_v33  ;;  %v765_v22 = vmul.f32 %v1128_v47, %v1553_v58  ;;  %v766_v6 = vmul.f32 %v1129_v63, %v1553_v58  ;;  %v1279_v47 = vld [vmem:[#allocation7 + $0xc8] sm:$0xff]  }
 0x26b   :  { %v1562_v2 = vpop.f32.mrf.mxu1  ;;  %v774_v8 = vmul.f32 %v1129_v63, %v1556_v59  ;;  %v758_v14 = vmul.f32 %v1129_v63, %v1560_v0  ;;  %v1018_v28 = vunpack.c.h.bf16 %v1051_v19  ;;  %v771_v51 = vmul.f32 %v1556_v59, %v1550_v57 }
 0x26c   :  { %v780_v11 = vmul.f32 %v778_v33, %v1562_v2  ;;  %v790_v12 = vpack.c.bf16 %v782_v62, %v781_v61  ;;  %v786_v16 = vpack.c.bf16 %v766_v6, %v765_v22  ;;  %v763_v54 = vmul.f32 %v1553_v58, %v1550_v57 }
 0x26d   :  { %1157 = vmatpush3.bf16.xpose.msra.mxu1 %v571_v40  ;;  %v788_v15 = vpack.c.bf16 %v774_v8, %v773_v4  ;;  %v1571_v17 = vpack.c.bf16 %v758_v14, %v757_v13  ;;  %v755_v10 = vmul.f32 %v1560_v0, %v1550_v57  ;;  %v756_v25 = vmul.f32 %v1560_v0, %v1562_v2  ;;  %v1282_v57 = vld [vmem:[#allocation7 + $0xb0] sm:$0xff]  }
 0x26e   :  { %1158 = vmatprep.subr.bf16.mxu1 %v570_v34  ;;  %1194 = vmatprep.subr.bf16.mxu0 %v790_v12  ;;  %v789_v30 = vpack.c.bf16 %v780_v11, %v779_v60  ;;  %v1284_v60 = vld [vmem:[#allocation7 + $0xa0] sm:$0xff]  }
 0x26f   :  { %v783_v33 = vpack.c.bf16 %v756_v25, %v755_v10 }
 0x275   :  { %1159 = vmatpush3.bf16.xpose.msra.mxu1 %v570_v34 }
 0x276   :  { %1160 = vmatprep.subr.bf16.mxu1 %v569_v43 }
 0x27d   :  { %1161 = vmatpush3.bf16.xpose.msra.mxu1 %v569_v43 }
 0x27e   :  { %1162 = vmatprep.subr.bf16.mxu1 %v568_v36 }
 0x285   :  { %1163 = vmatpush3.bf16.xpose.msra.mxu1 %v568_v36 }
 0x286   :  { %1164 = vmatprep.subr.bf16.mxu1 %v567_v44 }
 0x28d   :  { %1165 = vmatpush3.bf16.xpose.msra.mxu1 %v567_v44 }
 0x28e   :  { %1166 = vmatprep.subr.bf16.mxu1 %v566_v41 }
 0x295   :  { %1167 = vmatpush3.bf16.xpose.msra.mxu1 %v566_v41 }
 0x296   :  { %1168 = vmatprep.subr.bf16.mxu1 %v565_v52 }
 0x29d   :  { %1169 = vmatpush3.bf16.xpose.msra.mxu1 %v565_v52  ;;  %v772_v52 = vmul.f32 %v1556_v59, %v1562_v2  ;;  %v1283_v59 = vld [vmem:[#allocation7 + $0xa8] sm:$0xff]  }
 0x29e   :  { %1214 = vmatprep.subr.bf16.mxu1 %v1279_v47 }
 0x29f   :  { %v787_v53 = vpack.c.bf16 %v772_v52, %v771_v51 }
 0x2a4   :  { %1171 = vmatmul.mubr.bf16.vlgmr.msra.gmra.mxu1 %v532_v55  ;;  %v764_v55 = vmul.f32 %v1553_v58, %v1562_v2  ;;  %v1281_v58 = vld [vmem:[#allocation7 + $0xb8] sm:$0xff]  }
 0x2a5   :  { %1215 = vmatpush3.bf16.msra.mxu1 %v1279_v47 }
 0x2a6   :  { %v785_v9 = vpack.c.bf16 %v764_v55, %v763_v54  ;;  %1216 = vmatprep.subr.bf16.mxu1 %v1280_v56 }
 0x2a9   :  { %1217 = vmatpush3.bf16.msra.mxu1 %v1280_v56 }
 0x2aa   :  { %1218 = vmatprep.subr.bf16.mxu1 %v1281_v58 }
 0x2ad   :  { %1219 = vmatpush3.bf16.msra.mxu1 %v1281_v58 }
 0x2ae   :  { %1220 = vmatprep.subr.bf16.mxu1 %v1282_v57 }
 0x2b1   :  { %1221 = vmatpush3.bf16.msra.mxu1 %v1282_v57 }
 0x2b2   :  { %1222 = vmatprep.subr.bf16.mxu1 %v1283_v59 }
 0x2b5   :  { %1223 = vmatpush3.bf16.msra.mxu1 %v1283_v59 }
 0x2b6   :  { %1224 = vmatprep.subr.bf16.mxu1 %v1284_v60 }
 0x2b9   :  { %1225 = vmatpush3.bf16.msra.mxu1 %v1284_v60 }
 0x364   :  { %v1172_v5 = vpop.f32.mrf.mxu1 }
 0x365   :  { %v616_v27 = vadd.f32 %v1172_v5, %v1017_v21 }
 0x366   :  { %v607_v20 = vpop.f32.mrf.mxu1 }
 0x367   :  { %v608_v23 = vadd.f32 %v1013_v1, %v607_v20 }
 0x368   :  { %v1173_v24 = vpop.f32.mrf.mxu1 }
 0x369   :  { %622 = vmax.xlane.f32.xlu0 %v608_v23  ;;  %v619_v3 = vadd.f32 %v1173_v24, %v1018_v28 }
 0x36a   :  { %v610_v26 = vpop.f32.mrf.mxu1 }
 0x36b   :  { %v611_v29 = vadd.f32 %v1014_v7, %v610_v26 }
 0x36d   :  { %624 = vmax.xlane.f32.xlu1 %v611_v29  ;;  %626 = vmax.xlane.f32.xlu0 %v616_v27 }
 0x371   :  { %628 = vmax.xlane.f32.xlu0 %v619_v3 }
 0x3f2   :  { %v623_v31 = vpop.xlane.xlu0 %622 }
 0x3f3   :  { %v630_v32 = vsub.f32 %v608_v23, %v623_v31 }
 0x3f5   :  { %v634_v34 = vmul.f32 1.442695, %v630_v32 }
 0x3f6   :  { %v625_v35 = vpop.xlane.xlu1 %624  ;;  %v627_v36 = vpop.xlane.xlu0 %626 }
 0x3f7   :  { %v631_v37 = vsub.f32 %v611_v29, %v625_v35  ;;  %v632_v38 = vsub.f32 %v616_v27, %v627_v36  ;;  %1303 = vpow2.f32 %v634_v34 }
 0x3f9   :  { %v636_v39 = vmul.f32 1.442695, %v631_v37  ;;  %v638_v40 = vmul.f32 1.442695, %v632_v38 }
 0x3fa   :  { %v629_v41 = vpop.xlane.xlu0 %628 }
 0x3fb   :  { %1305 = vpow2.f32 %v636_v39  ;;  %v633_v42 = vsub.f32 %v619_v3, %v629_v41 }
 0x3fc   :  { %1307 = vpow2.f32 %v638_v40 }
 0x3fd   :  { %v640_v43 = vmul.f32 1.442695, %v633_v42 }
 0x3ff   :  { %1309 = vpow2.f32 %v640_v43 }
 0x404   :  { %v1573_v44 = vpop.eup %1303 }
 0x408   :  { %v1575_v45 = vpop.eup %1305 }
 0x409   :  { %v642_v46 = vpack.c.bf16 %v1575_v45, %v1573_v44  ;;  %v1308_v48 = vpop.eup %1307 }
 0x40b   :  { %1190 = vmatprep.mubr.bf16.mxu0 %v642_v46 }
 0x40c   :  { %v1310_v49 = vpop.eup %1309 }
 0x40d   :  { %v643_v50 = vpack.c.bf16 %v1310_v49, %v1308_v48 }
 0x40f   :  { %1191 = vmatmul.mubr.bf16.vlgmr.msra.gmra.mxu0 %v643_v50 }
 0x410   :  { %1195 = vmatpush3.bf16.msra.mxu0 %v790_v12 }
 0x411   :  { %1196 = vmatprep.subr.bf16.mxu0 %v789_v30 }
 0x414   :  { %1197 = vmatpush3.bf16.msra.mxu0 %v789_v30 }
 0x415   :  { %1198 = vmatprep.subr.bf16.mxu0 %v788_v15 }
 0x418   :  { %1199 = vmatpush3.bf16.msra.mxu0 %v788_v15  ;;  %v1285_v15 = vld [vmem:[#allocation7 + $0x98] sm:$0xff]  }
 0x419   :  { %1200 = vmatprep.subr.bf16.mxu0 %v787_v53  ;;  %1226 = vmatprep.subr.bf16.mxu1 %v1285_v15 }
 0x41a   :  { %1227 = vmatpush3.bf16.msra.mxu1 %v1285_v15 }
 0x41c   :  { %1201 = vmatpush3.bf16.msra.mxu0 %v787_v53 }
 0x41d   :  { %1202 = vmatprep.subr.bf16.mxu0 %v786_v16 }
 0x420   :  { %1203 = vmatpush3.bf16.msra.mxu0 %v786_v16  ;;  %v1286_v16 = vld [vmem:[#allocation7 + $0x90] sm:$0xff]  }
 0x421   :  { %1204 = vmatprep.subr.bf16.mxu0 %v785_v9  ;;  %1228 = vmatprep.subr.bf16.mxu1 %v1286_v16 }
 0x422   :  { %1229 = vmatpush3.bf16.msra.mxu1 %v1286_v16 }
 0x424   :  { %1205 = vmatpush3.bf16.msra.mxu0 %v785_v9 }
 0x425   :  { %1206 = vmatprep.subr.bf16.mxu0 %v1571_v17 }
 0x428   :  { %1207 = vmatpush3.bf16.msra.mxu0 %v1571_v17 }
 0x429   :  { %1208 = vmatprep.subr.bf16.mxu0 %v783_v33 }
 0x42c   :  { %1209 = vmatpush3.bf16.msra.mxu0 %v783_v33 }
 0x4cf   :  { %v1192_v61 = vpop.f32.mrf.mxu0 }
 0x4d1   :  { %v726_v63 = vpop.f32.mrf.mxu0 }
 0x4d2   :  { %1311 = vrcp.f32 %v726_v63 }
 0x4d3   :  { %v1193_v0 = vpop.f32.mrf.mxu0 }
 0x4d4   :  { %1313 = vrcp.f32 %v1193_v0 }
 0x4d5   :  { %1315 = vrcp.f32 %v1192_v61  ;;  %v729_v62 = vpop.f32.mrf.mxu0 }
 0x4d6   :  { %1317 = vrcp.f32 %v729_v62 }
 0x4df   :  { %v1312_v2 = vpop.eup %1311 }
 0x4e0   :  { %v745_v11 = vmul.f32 %v1312_v2, %v1573_v44 }
 0x4e1   :  { %v1314_v22 = vpop.eup %1313 }
 0x4e2   :  { %v1316_v4 = vpop.eup %1315  ;;  %v748_v8 = vmul.f32 %v1314_v22, %v1310_v49 }
 0x4e3   :  { %v1318_v6 = vpop.eup %1317  ;;  %v747_v13 = vmul.f32 %v1316_v4, %v1308_v48 }
 0x4e4   :  { %v746_v12 = vmul.f32 %v1318_v6, %v1575_v45 }
 0x4e5   :  { %v750_v30 = vpack.c.bf16 %v748_v8, %v747_v13 }
 0x4e6   :  { %v749_v14 = vpack.c.bf16 %v746_v12, %v745_v11 }
 0x4e8   :  { %1210 = vmatprep.mubr.bf16.mxu0 %v749_v14 }
 0x4e9   :  { %1211 = vmatmul.mubr.bf16.vlgmr.msra.gmra.mxu0 %v750_v30 }
 0x5a9   :  { %v1212_v17 = vpop.f32.mrf.mxu0 }
 0x5ab   :  { %v825_v18 = vpop.f32.mrf.mxu0 }
 0x5ad   :  { %v1213_v1 = vpop.f32.mrf.mxu0 }
 0x5ae   :  { %v841_v19 = vpack.c.bf16 %v1213_v1, %v1212_v17 }
 0x5af   :  { %v828_v5 = vpop.f32.mrf.mxu0 }
 0x5b0   :  { %v844_v20 = vunpack.c.l.bf16 %v841_v19  ;;  %v845_v21 = vunpack.c.h.bf16 %v841_v19  ;;  %v840_v23 = vpack.c.bf16 %v828_v5, %v825_v18 }
 0x5b2   :  { %848 = vst [vmem:[#allocation8 + $0x10] sm:$0xff] %v844_v20  ;;  %849 = vst [vmem:[#allocation8 + $0x18] sm:$0xff] %v845_v21  ;;  %v842_v7 = vunpack.c.l.bf16 %v840_v23  ;;  %v843_v24 = vunpack.c.h.bf16 %v840_v23  ;;  %1230 = vmatprep.mubr.bf16.mxu1 %v840_v23 }
 0x5b3   :  { %1231 = vmatmul.mubr.bf16.vlgmr.msra.gmra.mxu1 %v841_v19 }
 0x5b4   :  { %846 = vst [vmem:[#allocation8] sm:$0xff] %v842_v7  ;;  %847 = vst [vmem:[#allocation8 + $0x8] sm:$0xff] %v843_v24 }
 0x673   :  { %v1232_v26 = vpop.f32.mrf.mxu1 }
 0x674   :  { %949 = vst [vmem:[#allocation8 + $0x30] sm:$0xff] %v1232_v26 }
 0x675   :  { %v932_v27 = vpop.f32.mrf.mxu1 }
 0x676   :  { %947 = vst [vmem:[#allocation8 + $0x20] sm:$0xff] %v932_v27 }
 0x677   :  { %v1233_v28 = vpop.f32.mrf.mxu1 }
 0x678   :  { %950 = vst [vmem:[#allocation8 + $0x38] sm:$0xff] %v1233_v28 }
 0x679   :  { %v935_v29 = vpop.f32.mrf.mxu1 }
 0x67a   :  { %948 = vst [vmem:[#allocation8 + $0x28] sm:$0xff] %v935_v29 }
 0x67b   :  { %1390 = shalt.err (!%p1387_p5)
}
 0x67c   :  { %s1414_s4 = smov 128   ;;  %s1415_s5 = smov 8  }
 0x67d   :  { %962 = dma.vmem_to_hbm [thread:$0]  %s957_s2, 1024, %s1601_s3, [#allocation4], %s1414_s4, %s1414_s4, %s1415_s5  }
 0x67e   :  { %1403 = dma.done.wait [#allocation4], 1024  }
 0x67f   :  { %1404 = vsyncadd [#allocation4], 4294966272 }
 0x680   :  { %966 = vsyncpa [#allocation3], 1 }
 0x681   :  { %967 = vsyncpa [#allocation6], 1 }
 0x682   :  { %968 = vsyncpa [#allocation4], 1 }

</bundles_post_ra>
